<compile_context>
chip_gen: v7x
topology: tpu7x:2x2x1
jax: 0.10.0
libtpu: 0.0.40
codegen_flags: <defaults>
</compile_context>

<pallas_src>
import functools

import jax
import jax.numpy as jnp
from jax.experimental import pallas as pl
from jax.experimental.pallas import tpu as pltpu


def _actor_kernel(x_ref, w1_ref, b1_ref, w2_ref, b2_ref, w3_ref, b3_ref, o_ref,
                  *, max_action: float):
    """Fused 3-layer MLP on one batch tile: relu -> relu -> max_action*tanh."""
    x = x_ref[...]                                                      # (TB, S)
    h1 = jnp.dot(x, w1_ref[...], preferred_element_type=jnp.float32)   # (TB, H1)
    h1 = jnp.maximum(h1 + b1_ref[...], 0.0)                            # relu
    h2 = jnp.dot(h1, w2_ref[...], preferred_element_type=jnp.float32)  # (TB, H2)
    h2 = jnp.maximum(h2 + b2_ref[...], 0.0)                            # relu
    h3 = jnp.dot(h2, w3_ref[...], preferred_element_type=jnp.float32)  # (TB, A)
    # tanh goes to the EUP slot, the max_action scale to the VPU — both are
    # effectively free next to the DMA/grid-step overhead.
    o_ref[...] = (max_action * jnp.tanh(h3 + b3_ref[...])).astype(o_ref.dtype)


def _round_up(v: int, m: int) -> int:
    return ((v + m - 1) // m) * m


@functools.partial(jax.jit, static_argnames=("max_action", "batch_tile"))
def actor_forward(state, params, max_action: float, *, batch_tile: int = 2048):
    """Fused Actor forward pass via pallas_call.

    state:  (B, state_dim) float32
    params: dict with w1 (S,H1), b1 (1,H1), w2 (H1,H2), b2 (1,H2),
            w3 (H2,A), b3 (1,A) -- all float32, weights stored (in, out).
    """
    B, S = state.shape
    H1 = params["w1"].shape[1]
    H2 = params["w2"].shape[1]
    A = params["w3"].shape[1]

    # ---- batch-tile selection -------------------------------------------
    B_align = _round_up(B, 8)                      # sublane alignment
    if B_align >= 16:
        # At least 2 grid steps so v7x's two TensorCores can split the
        # "parallel" batch axis; cap each tile at `batch_tile` rows.
        grid_b = max(2, pl.cdiv(B_align, batch_tile))
    else:
        grid_b = 1
    TB = _round_up(pl.cdiv(B_align, grid_b), 8)    # grid_b*TB ~= B (minimal pad)
    grid_b = pl.cdiv(B_align, TB)
    B_pad = grid_b * TB

    x = state
    if B_pad != B:
        x = jnp.pad(x, ((0, B_pad - B), (0, 0)))   # padded rows -> tanh(...), sliced off

    kernel = functools.partial(_actor_kernel, max_action=float(max_action))

    weight_bytes = 4 * (S * H1 + H1 + H1 * H2 + H2 + H2 * A + A)
    cost = pl.CostEstimate(
        flops=2 * B_pad * (S * H1 + H1 * H2 + H2 * A),
        transcendentals=B_pad * A,
        bytes_accessed=4 * B_pad * (S + A) + weight_bytes,
    )

    out_padded = pl.pallas_call(
        kernel,
        out_shape=jax.ShapeDtypeStruct((B_pad, A), jnp.float32),
        grid=(grid_b,),
        in_specs=[
            pl.BlockSpec((TB, S), lambda i: (i, 0)),    # state tile (pipelined)
            pl.BlockSpec((S, H1), lambda i: (0, 0)),    # w1 (VMEM-resident)
            pl.BlockSpec((1, H1), lambda i: (0, 0)),    # b1
            pl.BlockSpec((H1, H2), lambda i: (0, 0)),   # w2
            pl.BlockSpec((1, H2), lambda i: (0, 0)),    # b2
            pl.BlockSpec((H2, A), lambda i: (0, 0)),    # w3 (no lane padding)
            pl.BlockSpec((1, A), lambda i: (0, 0)),     # b3
        ],
        out_specs=pl.BlockSpec((TB, A), lambda i: (i, 0)),  # narrow masked vst's: cheap
        compiler_params=pltpu.CompilerParams(
            dimension_semantics=("parallel",),          # dual-TC split on v7x
            vmem_limit_bytes=32 * 1024 * 1024,          # headroom on v5e's 16 MiB default
        ),
        cost_estimate=cost,
    )(x, params["w1"], params["b1"], params["w2"], params["b2"],
      params["w3"], params["b3"])

    if B_pad != B:
        return out_padded[:B, :]
    return out_padded


def init_actor_params(key, state_dim: int, action_dim: int):
    """Deterministic init mimicking PyTorch nn.Linear default:
    U(-1/sqrt(fan_in), 1/sqrt(fan_in)) for both weights and biases."""
    def linear(k, fan_in, fan_out):
        kw, kb = jax.random.split(k)
        bound = 1.0 / jnp.sqrt(jnp.float32(fan_in))
        w = jax.random.uniform(kw, (fan_in, fan_out), jnp.float32, -bound, bound)
        b = jax.random.uniform(kb, (1, fan_out), jnp.float32, -bound, bound)
        return w, b

    k1, k2, k3 = jax.random.split(key, 3)
    w1, b1 = linear(k1, state_dim, 64)
    w2, b2 = linear(k2, 64, 32)
    w3, b3 = linear(k3, 32, action_dim)
    return {"w1": w1, "b1": b1, "w2": w2, "b2": b2, "w3": w3, "b3": b3}


def actor_forward_ref(state, params, max_action: float):
    """Pure-JAX reference for correctness checking."""
    h1 = jnp.maximum(state @ params["w1"] + params["b1"], 0.0)
    h2 = jnp.maximum(h1 @ params["w2"] + params["b2"], 0.0)
    return max_action * jnp.tanh(h2 @ params["w3"] + params["b3"])


if __name__ == "__main__":
    state_dim = 16
    action_dim = 4
    batch = 2
    max_action = 2.0

    key = jax.random.PRNGKey(0)
    k_params, k_state = jax.random.split(key)

    params = init_actor_params(k_params, state_dim, action_dim)
    state = jax.random.normal(k_state, (batch, state_dim), dtype=jnp.float32)

    out = jax.block_until_ready(actor_forward(state, params, max_action))
    ref = actor_forward_ref(state, params, max_action)
    assert out.shape == (batch, action_dim), out.shape
    assert jnp.allclose(out, ref, atol=1e-5, rtol=1e-5), (out, ref)

    # Exercise the multi-tile / dual-TC path (grid_b >= 2, padded batch) once.
    big_state = jax.random.normal(jax.random.PRNGKey(1), (1024 + 40, state_dim),
                                  dtype=jnp.float32)
    big_out = jax.block_until_ready(actor_forward(big_state, params, max_action))
    big_ref = actor_forward_ref(big_state, params, max_action)
    assert big_out.shape == big_ref.shape
    assert jnp.allclose(big_out, big_ref, atol=1e-5, rtol=1e-5)

    print("KERNEL_OK")
</pallas_src>

<mosaic_0001>
module attributes {stable_mosaic.version = 11 : i64} {
  func.func @_actor_kernel(%arg0: i32, %arg1: memref<8x16xf32, #tpu.memory_space<vmem>>, %arg2: memref<16x64xf32, #tpu.memory_space<vmem>>, %arg3: memref<1x64xf32, #tpu.memory_space<vmem>>, %arg4: memref<64x32xf32, #tpu.memory_space<vmem>>, %arg5: memref<1x32xf32, #tpu.memory_space<vmem>>, %arg6: memref<32x4xf32, #tpu.memory_space<vmem>>, %arg7: memref<1x4xf32, #tpu.memory_space<vmem>>, %arg8: memref<8x4xf32, #tpu.memory_space<vmem>>) attributes {dimension_semantics = [#tpu.dimension_semantics<parallel>], iteration_bounds = array<i64: 1>, scalar_prefetch = 0 : i64, scratch_operands = 0 : i64, tpu.core_type = #tpu.core_type<tc>, window_params = [{transform_indices = @transform_0, window_bounds = array<i64: 8, 16>}, {pipeline_mode = #tpu.pipeline_mode<synchronous>, transform_indices = @transform_1, window_bounds = array<i64: 16, 64>}, {pipeline_mode = #tpu.pipeline_mode<synchronous>, transform_indices = @transform_2, window_bounds = array<i64: 1, 64>}, {pipeline_mode = #tpu.pipeline_mode<synchronous>, transform_indices = @transform_3, window_bounds = array<i64: 64, 32>}, {pipeline_mode = #tpu.pipeline_mode<synchronous>, transform_indices = @transform_4, window_bounds = array<i64: 1, 32>}, {pipeline_mode = #tpu.pipeline_mode<synchronous>, transform_indices = @transform_5, window_bounds = array<i64: 32, 4>}, {pipeline_mode = #tpu.pipeline_mode<synchronous>, transform_indices = @transform_6, window_bounds = array<i64: 1, 4>}, {transform_indices = @transform_7, window_bounds = array<i64: 8, 4>}]} {
    %c0 = arith.constant 0 : index
    %c0_0 = arith.constant 0 : index
    %0 = vector.load %arg1[%c0, %c0_0] : memref<8x16xf32, #tpu.memory_space<vmem>>, vector<8x16xf32>
    %c0_1 = arith.constant 0 : index
    %c0_2 = arith.constant 0 : index
    %1 = vector.load %arg2[%c0_1, %c0_2] : memref<16x64xf32, #tpu.memory_space<vmem>>, vector<16x64xf32>
    %cst = arith.constant dense<0.000000e+00> : vector<8x64xf32>
    %2 = tpu.matmul %0, %1, %cst {dimension_numbers = #tpu.dot_dimension_numbers<[1], [0], [0], [1], [0, 0, 1, 1], [], []>} : vector<8x16xf32>, vector<16x64xf32>, vector<8x64xf32> -> vector<8x64xf32>
    %c0_3 = arith.constant 0 : index
    %c0_4 = arith.constant 0 : index
    %3 = vector.load %arg3[%c0_3, %c0_4] : memref<1x64xf32, #tpu.memory_space<vmem>>, vector<1x64xf32>
    %4 = vector.broadcast %3 : vector<1x64xf32> to vector<8x64xf32>
    %5 = arith.addf %2, %4 : vector<8x64xf32>
    %cst_5 = arith.constant 0.000000e+00 : f32
    %6 = vector.broadcast %cst_5 : f32 to vector<8x64xf32>
    %7 = arith.maximumf %5, %6 : vector<8x64xf32>
    %c0_6 = arith.constant 0 : index
    %c0_7 = arith.constant 0 : index
    %8 = vector.load %arg4[%c0_6, %c0_7] : memref<64x32xf32, #tpu.memory_space<vmem>>, vector<64x32xf32>
    %cst_8 = arith.constant dense<0.000000e+00> : vector<8x32xf32>
    %9 = tpu.matmul %7, %8, %cst_8 {dimension_numbers = #tpu.dot_dimension_numbers<[1], [0], [0], [1], [0, 0, 1, 1], [], []>} : vector<8x64xf32>, vector<64x32xf32>, vector<8x32xf32> -> vector<8x32xf32>
    %c0_9 = arith.constant 0 : index
    %c0_10 = arith.constant 0 : index
    %10 = vector.load %arg5[%c0_9, %c0_10] : memref<1x32xf32, #tpu.memory_space<vmem>>, vector<1x32xf32>
    %11 = vector.broadcast %10 : vector<1x32xf32> to vector<8x32xf32>
    %12 = arith.addf %9, %11 : vector<8x32xf32>
    %cst_11 = arith.constant 0.000000e+00 : f32
    %13 = vector.broadcast %cst_11 : f32 to vector<8x32xf32>
    %14 = arith.maximumf %12, %13 : vector<8x32xf32>
    %c0_12 = arith.constant 0 : index
    %c0_13 = arith.constant 0 : index
    %15 = vector.load %arg6[%c0_12, %c0_13] : memref<32x4xf32, #tpu.memory_space<vmem>>, vector<32x4xf32>
    %cst_14 = arith.constant dense<0.000000e+00> : vector<8x4xf32>
    %16 = tpu.matmul %14, %15, %cst_14 {dimension_numbers = #tpu.dot_dimension_numbers<[1], [0], [0], [1], [0, 0, 1, 1], [], []>} : vector<8x32xf32>, vector<32x4xf32>, vector<8x4xf32> -> vector<8x4xf32>
    %c0_15 = arith.constant 0 : index
    %c0_16 = arith.constant 0 : index
    %17 = vector.load %arg7[%c0_15, %c0_16] : memref<1x4xf32, #tpu.memory_space<vmem>>, vector<1x4xf32>
    %18 = vector.broadcast %17 : vector<1x4xf32> to vector<8x4xf32>
    %19 = arith.addf %16, %18 : vector<8x4xf32>
    %20 = math.tanh %19 : vector<8x4xf32>
    %cst_17 = arith.constant 2.000000e+00 : f32
    %21 = vector.broadcast %cst_17 : f32 to vector<8x4xf32>
    %22 = arith.mulf %21, %20 : vector<8x4xf32>
    %c0_18 = arith.constant 0 : index
    %c0_19 = arith.constant 0 : index
    %23 = vector.load %arg8[%c0_18, %c0_19] : memref<8x4xf32, #tpu.memory_space<vmem>>, vector<8x4xf32>
    tpu.vector_store %arg8[%c0_18, %c0_19], %22 {strides = array<i32>} : memref<8x4xf32, #tpu.memory_space<vmem>>, vector<8x4xf32>,
    return
  }
  func.func @transform_0(%arg0: i32) -> (i32, i32) {
    %c0_i32 = arith.constant 0 : i32
    %c0_i32_0 = arith.constant 0 : i32
    return %arg0, %c0_i32 : i32, i32
  }
  func.func @transform_1(%arg0: i32) -> (i32, i32) {
    %c0_i32 = arith.constant 0 : i32
    %c0_i32_0 = arith.constant 0 : i32
    %c0_i32_1 = arith.constant 0 : i32
    return %c0_i32, %c0_i32_0 : i32, i32
  }
  func.func @transform_2(%arg0: i32) -> (i32, i32) {
    %c0_i32 = arith.constant 0 : i32
    %c0_i32_0 = arith.constant 0 : i32
    %c0_i32_1 = arith.constant 0 : i32
    return %c0_i32, %c0_i32_0 : i32, i32
  }
  func.func @transform_3(%arg0: i32) -> (i32, i32) {
    %c0_i32 = arith.constant 0 : i32
    %c0_i32_0 = arith.constant 0 : i32
    %c0_i32_1 = arith.constant 0 : i32
    return %c0_i32, %c0_i32_0 : i32, i32
  }
  func.func @transform_4(%arg0: i32) -> (i32, i32) {
    %c0_i32 = arith.constant 0 : i32
    %c0_i32_0 = arith.constant 0 : i32
    %c0_i32_1 = arith.constant 0 : i32
    return %c0_i32, %c0_i32_0 : i32, i32
  }
  func.func @transform_5(%arg0: i32) -> (i32, i32) {
    %c0_i32 = arith.constant 0 : i32
    %c0_i32_0 = arith.constant 0 : i32
    %c0_i32_1 = arith.constant 0 : i32
    return %c0_i32, %c0_i32_0 : i32, i32
  }
  func.func @transform_6(%arg0: i32) -> (i32, i32) {
    %c0_i32 = arith.constant 0 : i32
    %c0_i32_0 = arith.constant 0 : i32
    %c0_i32_1 = arith.constant 0 : i32
    return %c0_i32, %c0_i32_0 : i32, i32
  }
  func.func @transform_7(%arg0: i32) -> (i32, i32) {
    %c0_i32 = arith.constant 0 : i32
    %c0_i32_0 = arith.constant 0 : i32
    return %arg0, %c0_i32 : i32, i32
  }
}

</mosaic_0001>

<bundles_post_ra>
// kernel: actor_forward.1
= control target key start
LH: loop header
LB: loop body
LE: loop exit
PB: predicated region body
PF: predicated region fallthrough
CT: control target
= control target key end

     0   :  { %v380_v0 = vmov 0.0|0.0   ;;  %vm381_vm0 = vmmov 0   ;;  %v382_v3 = vmov 0.0   ;;  %vm36_vm1 = vcmask 130048   ;;  %s483_s1 = inlined_call_operand.vmem [shape: f32[16,64], index: 1, kind: input, shape index: {}]   ;;  %s484_s3 = inlined_call_operand.vmem [shape: f32[64,32], index: 3, kind: input, shape index: {}]   ;;  %s485_s0 = inlined_call_operand.vmem [shape: f32[8,16], index: 0, kind: input, shape index: {}]   ;;  %s486_s5 = inlined_call_operand.vmem [shape: f32[32,4], index: 5, kind: input, shape index: {}]   ;;  %s487_s2 = inlined_call_operand.vmem [shape: f32[1,64], index: 2, kind: input, shape index: {}]   ;;  %s488_s4 = inlined_call_operand.vmem [shape: f32[1,32], index: 4, kind: input, shape index: {}]   ;;  %s489_s6 = inlined_call_operand.vmem [shape: f32[1,4], index: 6, kind: input, shape index: {}]   ;;  %s490_s7 = inlined_call_operand.vmem [shape: f32[8,4], index: 7, kind: output, shape index: {}]  }
   0x1   :  { %354 = vmatprep.subr.bf16.mxu0 %v380_v0  ;;  %v27_v1 = vld [vmem:[%s483_s1] sm:$0xff]  ;;  %v28_v2 = vld [vmem:[%s483_s1 + $0x8] sm:$0xff]  ;;  %321 = vmatprep.mubr.msk.f32.mxu0 %vm381_vm0, %v382_v3  ;;  %v113_v7 = vld [vmem:[%s484_s3 + $0x10] sm:$0xff]  ;;  %vm126_vm2 = vcmask 523264   ;;  %vm212_vm3 = vcmask 261120   ;;  %vm288_vm4 = vcmask 31744  }
   0x2   :  { %v355_v4 = vpack.c.bf16 %v28_v2, %v27_v1  ;;  %357 = vmatprep.subr.bf16.mxu1 %v380_v0  ;;  %v111_v5 = vld [vmem:[%s484_s3] sm:$0xff]  ;;  %v112_v6 = vld [vmem:[%s484_s3 + $0x8] sm:$0xff]  ;;  %340 = vmatprep.mubr.msk.f32.mxu1 %vm381_vm0, %v382_v3  ;;  %v114_v9 = vld [vmem:[%s484_s3 + $0x18] sm:$0xff] }
   0x3   :  { %v358_v8 = vpack.c.bf16 %v112_v6, %v111_v5  ;;  %v26_v10 = vld [vmem:[%s485_s0] sm:$0xff]  ;;  %v361_v11 = vpack.c.bf16 %v114_v9, %v113_v7  ;;  %v116_v13 = vld [vmem:[%s484_s3 + $0x28] sm:$0xff]  ;;  %v117_v15 = vld [vmem:[%s484_s3 + $0x30] sm:$0xff] }
   0x4   :  { %356 = vmatpush3.bf16.msra.mxu0 %v355_v4  ;;  %v115_v12 = vld [vmem:[%s484_s3 + $0x20] sm:$0xff]  ;;  %v118_v16 = vld [vmem:[%s484_s3 + $0x38] sm:$0xff]  ;;  %v202_v19 = vld [vmem:[%s486_s5 + $0x8] sm:$0xff] }
   0x5   :  { %359 = vmatpush3.bf16.msra.mxu1 %v358_v8  ;;  %369 = vmatprep.subr.bf16.mxu0 %v380_v0  ;;  %v364_v14 = vpack.c.bf16 %v116_v13, %v115_v12  ;;  %v367_v17 = vpack.c.bf16 %v118_v16, %v117_v15  ;;  %v201_v18 = vld [vmem:[%s486_s5] sm:$0xff]  ;;  %v203_v26 = vld [vmem:[%s486_s5 + $0x10] sm:$0xff]  ;;  %v204_v27 = vld [vmem:[%s486_s5 + $0x18] sm:$0xff] }
   0x6   :  { %360 = vmatprep.subr.bf16.mxu1 %v380_v0  ;;  %v370_v20 = vpack.c.bf16 %v202_v19, %v201_v18  ;;  %v294_v21 = vld [vmem:[%s487_s2] ss:$0 sm:$0xff]  ;;  %v373_v28 = vpack.c.bf16 %v204_v27, %v203_v26 }
   0x7   :  { %322 = vmatmul.mubr.msk.f32.vlgmr.msra.gmra.mrb[0].mxu0 %vm36_vm1, %v26_v10  ;;  %v296_v29 = vld [vmem:[%s488_s4] ss:$0 sm:$0xff] }
   0x8   :  { %351 = vmatprep.mubr.msk.f32.mxu0 %vm381_vm0, %v382_v3  ;;  %371 = vmatpush3.bf16.msra.mxu0 %v370_v20  ;;  %v298_v34 = vld [vmem:[%s489_s6] ss:$0 sm:$0xff] }
   0x9   :  { %362 = vmatpush3.bf16.msra.mxu1 %v361_v11  ;;  %372 = vmatprep.subr.bf16.mxu0 %v380_v0 }
   0xa   :  { %363 = vmatprep.subr.bf16.mxu1 %v380_v0 }
   0xc   :  { %374 = vmatpush3.bf16.msra.mxu0 %v373_v28 }
   0xd   :  { %365 = vmatpush3.bf16.msra.mxu1 %v364_v14 }
   0xe   :  { %366 = vmatprep.subr.bf16.mxu1 %v380_v0 }
  0x11   :  { %368 = vmatpush3.bf16.msra.mxu1 %v367_v17 }
  0xda   :  { %v106_v22 = vpop.f32.mrb[0].mxu0 }
  0xdb   :  { %v107_v23 = vadd.f32 %v294_v21, %v106_v22  ;;  %v323_v24 = vpop.f32.mrb[1].mxu0 }
  0xdd   :  { %v110_v25 = vmax.f32 %v107_v23, 0.0 }
  0xdf   :  { %341 = vmatmul.mubr.msk.f32.vlgmr.msra.gmra.mrb[0].mxu1 %vm126_vm2, %v110_v25 }
 0x1b2   :  { %v196_v30 = vpop.f32.mrb[0].mxu1 }
 0x1b3   :  { %v197_v31 = vadd.f32 %v296_v29, %v196_v30  ;;  %v342_v32 = vpop.f32.mrb[1].mxu1 }
 0x1b5   :  { %v200_v33 = vmax.f32 %v197_v31, 0.0 }
 0x1b7   :  { %352 = vmatmul.mubr.msk.f32.vlgmr.msra.gmra.mrb[2].mxu0 %vm212_vm3, %v200_v33 }
 0x28a   :  { %v282_v35 = vpop.f32.mrb[2].mxu0 }
 0x28b   :  { %v283_v36 = vadd.f32 %v298_v34, %v282_v35  ;;  %v353_v37 = vpop.f32.mrb[3].mxu0 }
 0x28d   :  { %378 = vtanh.f32 %v283_v36 }
 0x297   :  { %v379_v38 = vpop.eup %378 }
 0x298   :  { %v287_v39 = vmul.f32 2.0, %v379_v38 }
 0x29a   :  { %289 = vst.msk [vmem:[%s490_s7] sm:$0xff] %vm288_vm4, %v287_v39 }

</bundles_post_ra>
